<compile_context>
chip_gen: v7x
topology: tpu7x:2x2x1
jax: 0.10.0
libtpu: 0.0.40
codegen_flags: <defaults>
</compile_context>

<pallas_src>
import jax
import jax.numpy as jnp
from jax.experimental import pallas as pl
from jax.experimental.pallas import tpu as pltpu

_LANE = 128      # vreg lane width (last dim)
_SUBLANE = 8     # f32 sublane count (second-to-last dim)

# Conservative budget for the grid-less, everything-resident path.  Chosen so
# it is safe on every generation (v7x default scoped VMEM is 32 MiB).
_SINGLE_SHOT_VMEM_BUDGET = 16 * 1024 * 1024


def _round_up(n, m):
    return ((n + m - 1) // m) * m


def _dqn_kernel(x_ref, w1_ref, b1_ref, w2_ref, b2_ref, o_ref):
    # x_ref : (TB, D_in)   w1_ref: (D_in, H)    b1_ref: (1, H)     [f32]
    # w2_ref: (H, D_out)   b2_ref: (1, D_out)   o_ref : (TB, D_out)
    #
    # Both matmuls run at the weight dtype's MXU rate (bf16 fast path on
    # v5e/v6e/v7x); accumulation is f32 via preferred_element_type, and the
    # bias add + ReLU epilogue stays f32 on the VPU (v5e has no bf16 VPU).
    h = jnp.dot(x_ref[...], w1_ref[...], preferred_element_type=jnp.float32)
    h = jnp.maximum(h + b1_ref[...], 0.0)
    out = jnp.dot(h.astype(w2_ref.dtype), w2_ref[...],
                  preferred_element_type=jnp.float32)
    o_ref[...] = (out + b2_ref[...]).astype(o_ref.dtype)


def dqn_forward(x, w1, b1, w2, b2, *, block_batch=1024):
    """relu(x @ w1 + b1) @ w2 + b2   (weights stored transposed vs. PyTorch).

    w1/w2 may be f32 or bf16 (bf16 = MXU fast path + half the weight/output
    HBM traffic); b1/b2 must be f32 with shape (1, H) / (1, D_out).
    Returns an array of shape (B, D_out) in the weight dtype.
    """
    B, D_in = x.shape
    H = w1.shape[1]
    D_out = w2.shape[1]

    compute_dtype = w1.dtype
    out_dtype = compute_dtype
    itemsize = jnp.dtype(compute_dtype).itemsize
    out_itemsize = jnp.dtype(out_dtype).itemsize

    # Cast x once in the wrapper (not per-tile inside the kernel): halves the
    # x DMA on the bf16 path and is a no-op for f32.
    if x.dtype != compute_dtype:
        x = x.astype(compute_dtype)

    block_batch = max(_SUBLANE, _round_up(block_batch, _SUBLANE))

    # Static bytes of the weights/biases (resident either way).
    w_bytes = (D_in * H + H * D_out) * itemsize + (H + D_out) * 4

    # ---- single-shot feasibility: small batch AND fits a VMEM budget -------
    b_pad_single = _round_up(B, _SUBLANE)
    single_bytes = (b_pad_single * D_in * itemsize
                    + b_pad_single * D_out * out_itemsize
                    + w_bytes)
    single_shot = (B <= block_batch) and (single_bytes <= _SINGLE_SHOT_VMEM_BUDGET)

    if single_shot:
        # One invocation, everything resident in VMEM, no grid / no pipelining.
        b_pad = b_pad_single
        if b_pad != B:
            x = jnp.pad(x, ((0, b_pad - B), (0, 0)))
        out = pl.pallas_call(
            _dqn_kernel,
            out_shape=jax.ShapeDtypeStruct((b_pad, D_out), out_dtype),
            in_specs=[pl.BlockSpec(memory_space=pltpu.MemorySpace.VMEM)] * 5,
            out_specs=pl.BlockSpec(memory_space=pltpu.MemorySpace.VMEM),
        )(x, w1, b1, w2, b2)
    else:
        # Batch-tiled grid; weights/biases held resident across all tiles.
        # "parallel" lets v7x shard the batch axis across both TensorCores.
        b_pad = _round_up(B, block_batch)
        if b_pad != B:
            x = jnp.pad(x, ((0, b_pad - B), (0, 0)))
        grid = (b_pad // block_batch,)
        flops = 2 * b_pad * (D_in * H + H * D_out)
        bytes_accessed = (b_pad * D_in * itemsize
                          + b_pad * D_out * out_itemsize
                          + w_bytes)
        out = pl.pallas_call(
            _dqn_kernel,
            out_shape=jax.ShapeDtypeStruct((b_pad, D_out), out_dtype),
            grid=grid,
            in_specs=[
                pl.BlockSpec((block_batch, D_in), lambda i: (i, 0)),
                pl.BlockSpec((D_in, H), lambda i: (0, 0)),
                pl.BlockSpec((1, H), lambda i: (0, 0)),
                pl.BlockSpec((H, D_out), lambda i: (0, 0)),
                pl.BlockSpec((1, D_out), lambda i: (0, 0)),
            ],
            out_specs=pl.BlockSpec((block_batch, D_out), lambda i: (i, 0)),
            compiler_params=pltpu.CompilerParams(
                dimension_semantics=("parallel",)),
            cost_estimate=pl.CostEstimate(
                flops=flops, bytes_accessed=bytes_accessed, transcendentals=0),
        )(x, w1, b1, w2, b2)

    return out[:B]


def prepare_params(w1, b1, w2, b2, weight_dtype=jnp.float32):
    """One-time weight-side preprocessing (dtype cast, bias reshape).

    Call once (e.g. at model load), NOT per forward call.
    """
    w1 = jnp.asarray(w1, weight_dtype)
    w2 = jnp.asarray(w2, weight_dtype)
    b1 = jnp.asarray(b1, jnp.float32).reshape(1, -1)
    b2 = jnp.asarray(b2, jnp.float32).reshape(1, -1)
    return w1, b1, w2, b2


def init_dqn_params(key, input_dim, output_dim, hidden_dim=128,
                    weight_dtype=jnp.float32):
    """PyTorch-Linear-like uniform init; weights stored transposed."""
    k1, k2, k3, k4 = jax.random.split(key, 4)
    bound1 = 1.0 / jnp.sqrt(input_dim)
    bound2 = 1.0 / jnp.sqrt(hidden_dim)
    w1 = jax.random.uniform(k1, (input_dim, hidden_dim), jnp.float32,
                            -bound1, bound1)
    b1 = jax.random.uniform(k2, (1, hidden_dim), jnp.float32, -bound1, bound1)
    w2 = jax.random.uniform(k3, (hidden_dim, output_dim), jnp.float32,
                            -bound2, bound2)
    b2 = jax.random.uniform(k4, (1, output_dim), jnp.float32, -bound2, bound2)
    return prepare_params(w1, b1, w2, b2, weight_dtype)


if __name__ == "__main__":
    # Small shapes consistent with the module: batch=8, input_dim=16,
    # hidden_dim=128 (module default), output_dim=8.
    B, D_in, H, D_out = 8, 16, 128, 8

    key = jax.random.PRNGKey(0)
    kx, kp = jax.random.split(key)
    x = jax.random.normal(kx, (B, D_in), dtype=jnp.float32)

    # --- f32 path (exact check), grid-less single-shot kernel ---------------
    w1, b1, w2, b2 = init_dqn_params(kp, D_in, D_out, hidden_dim=H)
    out = jax.block_until_ready(dqn_forward(x, w1, b1, w2, b2))
    ref = jnp.maximum(x @ w1 + b1, 0.0) @ w2 + b2
    assert out.shape == (B, D_out)
    assert out.dtype == jnp.float32
    assert jnp.allclose(out, ref, atol=1e-5, rtol=1e-5)

    # --- batch-tiled path (weights resident, "parallel" batch grid) ---------
    B_big = 2048
    xb = jax.random.normal(jax.random.PRNGKey(1), (B_big, D_in), jnp.float32)
    out_big = jax.block_until_ready(
        dqn_forward(xb, w1, b1, w2, b2, block_batch=512))
    ref_big = jnp.maximum(xb @ w1 + b1, 0.0) @ w2 + b2
    assert out_big.shape == (B_big, D_out)
    assert jnp.allclose(out_big, ref_big, atol=1e-5, rtol=1e-5)

    # --- bf16-weight fast path (bf16 MXU rate, f32 accumulate, bf16 output) -
    w1h, b1h, w2h, b2h = init_dqn_params(kp, D_in, D_out, hidden_dim=H,
                                         weight_dtype=jnp.bfloat16)
    out_bf = jax.block_until_ready(dqn_forward(x, w1h, b1h, w2h, b2h))
    assert out_bf.shape == (B, D_out)
    assert out_bf.dtype == jnp.bfloat16
    assert jnp.allclose(out_bf.astype(jnp.float32), ref, atol=5e-2, rtol=5e-2)

    print("KERNEL_OK")
</pallas_src>

<mosaic_0001>
module attributes {stable_mosaic.version = 11 : i64} {
  func.func @_dqn_kernel(%arg0: memref<8x16xf32, #tpu.memory_space<vmem>>, %arg1: memref<16x128xf32, #tpu.memory_space<vmem>>, %arg2: memref<1x128xf32, #tpu.memory_space<vmem>>, %arg3: memref<128x8xf32, #tpu.memory_space<vmem>>, %arg4: memref<1x8xf32, #tpu.memory_space<vmem>>, %arg5: memref<8x8xf32, #tpu.memory_space<vmem>>) attributes {dimension_semantics = [], scalar_prefetch = 0 : i64, scratch_operands = 0 : i64, tpu.core_type = #tpu.core_type<tc>} {
    %c0 = arith.constant 0 : index
    %c0_0 = arith.constant 0 : index
    %0 = vector.load %arg0[%c0, %c0_0] : memref<8x16xf32, #tpu.memory_space<vmem>>, vector<8x16xf32>
    %c0_1 = arith.constant 0 : index
    %c0_2 = arith.constant 0 : index
    %1 = vector.load %arg1[%c0_1, %c0_2] : memref<16x128xf32, #tpu.memory_space<vmem>>, vector<16x128xf32>
    %cst = arith.constant dense<0.000000e+00> : vector<8x128xf32>
    %2 = tpu.matmul %0, %1, %cst {dimension_numbers = #tpu.dot_dimension_numbers<[1], [0], [0], [1], [0, 0, 1, 1], [], []>} : vector<8x16xf32>, vector<16x128xf32>, vector<8x128xf32> -> vector<8x128xf32>
    %c0_3 = arith.constant 0 : index
    %c0_4 = arith.constant 0 : index
    %3 = vector.load %arg2[%c0_3, %c0_4] : memref<1x128xf32, #tpu.memory_space<vmem>>, vector<1x128xf32>
    %4 = vector.broadcast %3 : vector<1x128xf32> to vector<8x128xf32>
    %5 = arith.addf %2, %4 : vector<8x128xf32>
    %cst_5 = arith.constant 0.000000e+00 : f32
    %6 = vector.broadcast %cst_5 : f32 to vector<8x128xf32>
    %7 = arith.maximumf %5, %6 : vector<8x128xf32>
    %c0_6 = arith.constant 0 : index
    %c0_7 = arith.constant 0 : index
    %8 = vector.load %arg3[%c0_6, %c0_7] : memref<128x8xf32, #tpu.memory_space<vmem>>, vector<128x8xf32>
    %cst_8 = arith.constant dense<0.000000e+00> : vector<8x8xf32>
    %9 = tpu.matmul %7, %8, %cst_8 {dimension_numbers = #tpu.dot_dimension_numbers<[1], [0], [0], [1], [0, 0, 1, 1], [], []>} : vector<8x128xf32>, vector<128x8xf32>, vector<8x8xf32> -> vector<8x8xf32>
    %c0_9 = arith.constant 0 : index
    %c0_10 = arith.constant 0 : index
    %10 = vector.load %arg4[%c0_9, %c0_10] : memref<1x8xf32, #tpu.memory_space<vmem>>, vector<1x8xf32>
    %11 = vector.broadcast %10 : vector<1x8xf32> to vector<8x8xf32>
    %12 = arith.addf %9, %11 : vector<8x8xf32>
    %c0_11 = arith.constant 0 : index
    %c0_12 = arith.constant 0 : index
    %13 = vector.load %arg5[%c0_11, %c0_12] : memref<8x8xf32, #tpu.memory_space<vmem>>, vector<8x8xf32>
    tpu.vector_store %arg5[%c0_11, %c0_12], %12 {strides = array<i32>} : memref<8x8xf32, #tpu.memory_space<vmem>>, vector<8x8xf32>,
    return
  }
}

</mosaic_0001>

<bundles_post_ra>
// kernel: tpu_custom_call.1
= control target key start
LH: loop header
LB: loop body
LE: loop exit
PB: predicated region body
PF: predicated region fallthrough
CT: control target
= control target key end

     0   :  { %v335_v2 = vmov 0.0|0.0   ;;  %vm336_vm0 = vmmov 0   ;;  %v337_v4 = vmov 0.0   ;;  %vm31_vm1 = vcmask 130048   ;;  %s444_s0 = inlined_call_operand.vmem [shape: f32[8,16], index: 0, kind: input, shape index: {}]   ;;  %s445_s1 = inlined_call_operand.vmem [shape: f32[16,128], index: 1, kind: input, shape index: {}]   ;;  %s446_s2 = inlined_call_operand.vmem [shape: f32[1,128], index: 2, kind: input, shape index: {}]   ;;  %s447_s3 = inlined_call_operand.vmem [shape: f32[128,8], index: 3, kind: input, shape index: {}]   ;;  %s448_s4 = inlined_call_operand.vmem [shape: f32[1,8], index: 4, kind: input, shape index: {}]   ;;  %s449_s5 = inlined_call_operand.hbm [shape: f32[8,8], index: 5, kind: output, shape index: {}]  }
   0x1   :  { %v22_v0 = vld [vmem:[%s445_s1] sm:$0xff]  ;;  %v23_v1 = vld [vmem:[%s445_s1 + $0x8] sm:$0xff]  ;;  %280 = vmatprep.subr.bf16.mxu0 %v335_v2  ;;  %242 = vmatprep.mubr.msk.f32.mxu0 %vm336_vm0, %v337_v4  ;;  %v108_v7 = vld [vmem:[%s447_s3 + $0x10] sm:$0xff] }
   0x2   :  { %v281_v3 = vpack.c.bf16 %v23_v1, %v22_v0  ;;  %v106_v5 = vld [vmem:[%s447_s3] sm:$0xff]  ;;  %v107_v6 = vld [vmem:[%s447_s3 + $0x8] sm:$0xff]  ;;  %283 = vmatprep.subr.bf16.mxu1 %v335_v2  ;;  %v109_v9 = vld [vmem:[%s447_s3 + $0x18] sm:$0xff]  ;;  %277 = vmatprep.mubr.msk.f32.mxu1 %vm336_vm0, %v337_v4 }
   0x3   :  { %v284_v8 = vpack.c.bf16 %v107_v6, %v106_v5  ;;  %v21_v10 = vld [vmem:[%s444_s0] sm:$0xff]  ;;  %v287_v11 = vpack.c.bf16 %v109_v9, %v108_v7  ;;  %v111_v13 = vld [vmem:[%s447_s3 + $0x28] sm:$0xff] }
   0x4   :  { %282 = vmatpush3.bf16.msra.mxu0 %v281_v3  ;;  %v110_v12 = vld [vmem:[%s447_s3 + $0x20] sm:$0xff] }
   0x5   :  { %285 = vmatpush3.bf16.msra.mxu1 %v284_v8 }
   0x6   :  { %286 = vmatprep.subr.bf16.mxu1 %v335_v2 }
   0x7   :  { %243 = vmatmul.mubr.msk.f32.vlgmr.msra.gmra.mrb[0].mxu0 %vm31_vm1, %v21_v10 }
   0x8   :  { %10 = vsyncpa [#allocation3], 0  ;;  %v290_v14 = vpack.c.bf16 %v111_v13, %v110_v12  ;;  %v112_v15 = vld [vmem:[%s447_s3 + $0x30] sm:$0xff]  ;;  %v113_v16 = vld [vmem:[%s447_s3 + $0x38] sm:$0xff]  ;;  %s338_s7 = smov [#allocation2]   ;;  %vm199_vm2 = vcmask 64512  }
   0x9   :  { %288 = vmatpush3.bf16.msra.mxu1 %v287_v11  ;;  %v293_v17 = vpack.c.bf16 %v113_v16, %v112_v15  ;;  %v114_v18 = vld [vmem:[%s447_s3 + $0x40] sm:$0xff]  ;;  %v115_v19 = vld [vmem:[%s447_s3 + $0x48] sm:$0xff]  ;;  %v116_v21 = vld [vmem:[%s447_s3 + $0x50] sm:$0xff]  ;;  %s207_s8 = sshll.u32 %s338_s7, 4  ;;  %s208_s8 = int_to_ptr.vmem [resolvable:$true] %s207_s8 }
   0xa   :  { %289 = vmatprep.subr.bf16.mxu1 %v335_v2  ;;  %v296_v20 = vpack.c.bf16 %v115_v19, %v114_v18  ;;  %v117_v22 = vld [vmem:[%s447_s3 + $0x58] sm:$0xff]  ;;  %v118_v24 = vld [vmem:[%s447_s3 + $0x60] sm:$0xff]  ;;  %v119_v25 = vld [vmem:[%s447_s3 + $0x68] sm:$0xff]  ;;  %p316_p1 = scmp.lt.s32.totalorder %s208_s8, %s208_s8 }
   0xb   :  { %v299_v23 = vpack.c.bf16 %v117_v22, %v116_v21  ;;  %v302_v26 = vpack.c.bf16 %v119_v25, %v118_v24  ;;  %v120_v27 = vld [vmem:[%s447_s3 + $0x70] sm:$0xff]  ;;  %v121_v28 = vld [vmem:[%s447_s3 + $0x78] sm:$0xff]  ;;  %v215_v30 = vld [vmem:[%s446_s2] ss:$0 sm:$0xff]  ;;  %s311_s3 = scalar_lea.vmem %s208_s8, 128 }
   0xc   :  { %v305_v29 = vpack.c.bf16 %v121_v28, %v120_v27  ;;  %v217_v35 = vld [vmem:[%s448_s4] ss:$0 sm:$0xff]  ;;  %p312_p0 = scmp.ne.s32.totalorder %s208_s8, %s311_s3  ;;  %p317_p2 = scmp.lt.s32.totalorder %s311_s3, %s311_s3 }
   0xd   :  { %291 = vmatpush3.bf16.msra.mxu1 %v290_v14 }
   0xe   :  { %292 = vmatprep.subr.bf16.mxu1 %v335_v2  ;;  %p318_p3 = por %p317_p2, %p316_p1 }
  0x10   :  { %p319_p4 = pnand %p318_p3, %p312_p0 }
  0x11   :  { %294 = vmatpush3.bf16.msra.mxu1 %v293_v17 }
  0x12   :  { %295 = vmatprep.subr.bf16.mxu1 %v335_v2 }
  0x15   :  { %297 = vmatpush3.bf16.msra.mxu1 %v296_v20 }
  0x16   :  { %298 = vmatprep.subr.bf16.mxu1 %v335_v2 }
  0x19   :  { %300 = vmatpush3.bf16.msra.mxu1 %v299_v23 }
  0x1a   :  { %301 = vmatprep.subr.bf16.mxu1 %v335_v2 }
  0x1d   :  { %303 = vmatpush3.bf16.msra.mxu1 %v302_v26 }
  0x1e   :  { %304 = vmatprep.subr.bf16.mxu1 %v335_v2 }
  0x21   :  { %306 = vmatpush3.bf16.msra.mxu1 %v305_v29 }
  0xda   :  { %v101_v31 = vpop.f32.mrb[0].mxu0 }
  0xdb   :  { %v102_v32 = vadd.f32 %v215_v30, %v101_v31  ;;  %v244_v33 = vpop.f32.mrb[1].mxu0 }
  0xdd   :  { %v105_v34 = vmax.f32 %v102_v32, 0.0 }
  0xdf   :  { %278 = vmatmul.mubr.f32.vlgmr.msra.gmra.mrb[0].mxu1 %v105_v34 }
 0x1b2   :  { %v195_v36 = vpop.f32.mrb[0].mxu1 }
 0x1b3   :  { %v196_v37 = vadd.f32 %v217_v35, %v195_v36  ;;  %v279_v38 = vpop.f32.mrb[1].mxu1 }
 0x1b5   :  { %200 = vst.msk [vmem:[#allocation2] sm:$0xff] %vm199_vm2, %v196_v37 }
 0x1b6   :  { %322 = shalt.err (!%p319_p4)
}
 0x1b7   :  { %s323_s10 = scalar_lea.hbm %s449_s5, 128 }
 0x1b8   :  { %p324_p5 = scmp.ne.s32.totalorder %s449_s5, %s323_s10  ;;  %p327_p6 = scmp.lt.u32.totalorder %s323_s10, %s449_s5 }
 0x1ba   :  { %p329_p7 = pnand %p327_p6, %p324_p5 }
 0x1bc   :  { %332 = shalt.err (!%p329_p7)
}
 0x1bd   :  { %210 = dma.vmem_to_hbm [thread:$0]  %s208_s8, 128, %s449_s5, [#allocation3]  }
 0x1be   :  { %333 = dma.done.wait [#allocation3], 128  }
 0x1bf   :  { %334 = vsyncadd [#allocation3], 4294967168 }
 0x1c0   :  { %214 = vsyncpa [#allocation3], 1 }

</bundles_post_ra>
